<compile_context>
chip_gen: v5e
topology: v5e:2x2
jax: 0.10.0
libtpu: 0.0.40
codegen_flags: <defaults>
</compile_context>

<pallas_src>
import functools

import jax
import jax.numpy as jnp
from jax.experimental import pallas as pl
from jax.experimental.pallas import tpu as pltpu


def _round_up(x, m):
    return ((x + m - 1) // m) * m


def _cdiv(a, b):
    return (a + b - 1) // b


def _vmem_limit_bytes():
    """Generation-aware VMEM budget (~90% of physical, capped at 128 MiB)."""
    try:
        cap = pltpu.get_tpu_info().vmem_capacity_bytes
    except Exception:  # query unavailable -> conservative (fits v7x's 64 MiB)
        cap = 64 * 1024 * 1024
    return int(min(cap * 0.9, 128 * 1024 * 1024))


# ---------------------------------------------------------------------------
# Kernels
# ---------------------------------------------------------------------------

def _flat_matmul_bias_kernel(x_ref, w_ref, b_ref, o_ref):
    """(tm, D) @ (D, tn) + bias with the batch flattened into M."""
    y = jnp.dot(x_ref[...], w_ref[...], preferred_element_type=jnp.float32)
    o_ref[...] = (y + b_ref[...]).astype(o_ref.dtype)


def _restrict_project_kernel(x_ref, w_ref, b_ref, o_ref):
    """Per-batch (tl, D) @ (D, d_out) + bias; the 'last'/'first' restrict is
    expressed entirely in the x BlockSpec index_map (no XLA-side copy)."""
    y = jnp.dot(x_ref[0], w_ref[...], preferred_element_type=jnp.float32)
    o_ref[0] = (y + b_ref[...]).astype(o_ref.dtype)


def _sum_decoder_kernel(x_ref, w_ref, b_ref, o_ref, carry_ref, *,
                        seq_len, tile_l, skip_tiles, mask_tail):
    """mode='sum', L-tiled with a float32 running carry.

    Project-then-cumsum (linearity of the Linear layer): per tile
        y = x_tile @ W          (MXU, f32 accumulate)
    Pure-prefix tiles (strictly before the output window) only update a
    (1, d_out) f32 carry via a ones-row matmul (MXU reduce); window tiles do a
    short cumsum in d_out-wide space and write their output block.
    """
    t = pl.program_id(1)

    @pl.when(t == 0)
    def _():
        carry_ref[...] = jnp.zeros_like(carry_ref)

    y = jnp.dot(x_ref[0], w_ref[...], preferred_element_type=jnp.float32)

    if mask_tail:  # last tile may extend past L: zero out-of-range rows
        row = jax.lax.broadcasted_iota(jnp.int32, (tile_l, 1), 0)
        y = jnp.where(t * tile_l + row < seq_len, y, 0.0)

    if skip_tiles > 0:
        @pl.when(t < skip_tiles)
        def _():
            ones_row = jnp.ones((1, tile_l), dtype=jnp.float32)
            carry_ref[...] += jnp.dot(ones_row, y,
                                      preferred_element_type=jnp.float32)

    @pl.when(t >= skip_tiles)
    def _():
        c = carry_ref[...] + jnp.cumsum(y, axis=0)        # (tile_l, d_out) f32
        carry_ref[...] = c[tile_l - 1:tile_l, :]
        o_ref[0] = (c + b_ref[...]).astype(o_ref.dtype)


# ---------------------------------------------------------------------------
# pallas_call wrappers
# ---------------------------------------------------------------------------

def _flat_projection(x_flat, weight_t, bias2d, block_m, block_n, vmem_limit):
    M, D = x_flat.shape
    d_out_p = weight_t.shape[1]
    tm = M if M <= block_m else block_m              # block_m is a multiple of 8
    tn = d_out_p if d_out_p <= block_n else block_n  # block_n multiple of 128
    grid = (_cdiv(M, tm), _cdiv(d_out_p, tn))

    # N is the inner (fastest) axis so the x tile stays resident across the
    # whole N sweep (tn >= tm by default => lower-traffic ordering); the last
    # partial M/N blocks are handled by grid cdiv + clipped writeback (no pad).
    return pl.pallas_call(
        _flat_matmul_bias_kernel,
        out_shape=jax.ShapeDtypeStruct((M, d_out_p), x_flat.dtype),
        grid_spec=pltpu.PrefetchScalarGridSpec(
            num_scalar_prefetch=0,
            grid=grid,
            in_specs=[
                pl.BlockSpec((tm, D), lambda i, j: (i, 0)),
                pl.BlockSpec((D, tn), lambda i, j: (0, j)),
                pl.BlockSpec((1, tn), lambda i, j: (0, j)),
            ],
            out_specs=pl.BlockSpec((tm, tn), lambda i, j: (i, j)),
        ),
        compiler_params=pltpu.CompilerParams(
            dimension_semantics=("parallel", "parallel"),
            vmem_limit_bytes=vmem_limit,
        ),
    )(x_flat, weight_t, bias2d)


def _restricted_projection(x, weight_t, bias2d, mode, l_output, tile_l,
                           vmem_limit):
    """'last'/'first' with the sequence restrict done inside the kernel."""
    B, L, D = x.shape
    d_out_p = weight_t.shape[1]
    n_prefix = L - l_output
    if mode == "last":
        a_start = (n_prefix // tile_l) * tile_l      # block-aligned read window
        n_t = _cdiv(L - a_start, tile_l)
        row_start = n_prefix - a_start
    else:  # first
        a_start = 0
        n_t = _cdiv(l_output, tile_l)
        row_start = 0
    off_blk = a_start // tile_l
    out_len = n_t * tile_l

    out = pl.pallas_call(
        _restrict_project_kernel,
        out_shape=jax.ShapeDtypeStruct((B, out_len, d_out_p), x.dtype),
        grid_spec=pltpu.PrefetchScalarGridSpec(
            num_scalar_prefetch=0,
            grid=(B, n_t),
            in_specs=[
                pl.BlockSpec((1, tile_l, D), lambda b, j: (b, j + off_blk, 0)),
                pl.BlockSpec((D, d_out_p), lambda b, j: (0, 0)),
                pl.BlockSpec((1, d_out_p), lambda b, j: (0, 0)),
            ],
            out_specs=pl.BlockSpec((1, tile_l, d_out_p),
                                   lambda b, j: (b, j, 0)),
        ),
        compiler_params=pltpu.CompilerParams(
            dimension_semantics=("parallel", "parallel"),
            vmem_limit_bytes=vmem_limit,
        ),
    )(x, weight_t, bias2d)

    if row_start == 0 and out_len == l_output:
        return out
    return jax.lax.slice_in_dim(out, row_start, row_start + l_output, axis=1)


def _sum_projection(x, weight_t, bias2d, l_output, block_l, vmem_limit):
    B, L, D = x.shape
    d_out_p = weight_t.shape[1]
    tile_l = L if L <= block_l else block_l
    n_t = _cdiv(L, tile_l)
    n_prefix = L - l_output
    a_start = (n_prefix // tile_l) * tile_l
    skip = a_start // tile_l          # tiles strictly before the output window
    out_len = (n_t - skip) * tile_l
    row_start = n_prefix - a_start
    mask_tail = (L % tile_l) != 0

    kernel = functools.partial(_sum_decoder_kernel, seq_len=L, tile_l=tile_l,
                               skip_tiles=skip, mask_tail=mask_tail)
    if skip > 0:
        out_map = lambda b, t: (b, jnp.maximum(t - skip, 0), 0)
    else:
        out_map = lambda b, t: (b, t, 0)

    out = pl.pallas_call(
        kernel,
        out_shape=jax.ShapeDtypeStruct((B, out_len, d_out_p), x.dtype),
        grid_spec=pltpu.PrefetchScalarGridSpec(
            num_scalar_prefetch=0,
            grid=(B, n_t),
            in_specs=[
                pl.BlockSpec((1, tile_l, D), lambda b, t: (b, t, 0)),
                pl.BlockSpec((D, d_out_p), lambda b, t: (0, 0)),
                pl.BlockSpec((1, d_out_p), lambda b, t: (0, 0)),
            ],
            out_specs=pl.BlockSpec((1, tile_l, d_out_p), out_map),
            scratch_shapes=[pltpu.VMEM((1, d_out_p), jnp.float32)],
        ),
        compiler_params=pltpu.CompilerParams(
            dimension_semantics=("parallel", "arbitrary"),
            vmem_limit_bytes=vmem_limit,
        ),
    )(x, weight_t, bias2d)

    if row_start == 0 and out_len == l_output:
        return out
    return jax.lax.slice_in_dim(out, row_start, row_start + l_output, axis=1)


# ---------------------------------------------------------------------------
# Public wrapper (SequenceDecoder.forward)
# ---------------------------------------------------------------------------

def sequence_decoder_forward(x, weight_t, bias, *, l_output=None, mode="last",
                             block_m=512, block_n=1024, block_l=256,
                             min_pallas_m=1024):
    """Pallas implementation of SequenceDecoder.forward.

    x:        (B, L, D)
    weight_t: (D, d_output)   (PyTorch nn.Linear weight, transposed)
    bias:     (d_output,)
    l_output: int or None; None -> full length; 0 -> take 1 element + squeeze.
    mode:     'last' | 'first' | 'sum'
    """
    B, L, D = x.shape
    d_out = weight_t.shape[1]

    squeeze = False
    if l_output is None:
        l_output = L
    elif l_output == 0:
        l_output, squeeze = 1, True
    assert 0 < l_output <= L

    if mode not in ("last", "first", "sum"):
        raise NotImplementedError(f"mode={mode!r} not supported in kernel")

    block_m = max(8, _round_up(block_m, 8))
    block_n = max(128, _round_up(block_n, 128))
    block_l = max(8, _round_up(block_l, 8))

    # Small-problem fast path: a single tiny GEMM cannot amortize the fixed
    # pallas_call / pipeline setup cost — let XLA fuse it.
    if mode in ("last", "first") and B * l_output <= min_pallas_m:
        if mode == "last":
            xr = jax.lax.slice_in_dim(x, L - l_output, L, axis=1)
        else:
            xr = jax.lax.slice_in_dim(x, 0, l_output, axis=1)
        out = xr @ weight_t + bias
        return out[:, 0, :] if squeeze else out

    vmem_limit = _vmem_limit_bytes()

    # Lane-dense stores: pad d_out up to a multiple of 128 only when it is
    # large enough for masked partial stores to matter.
    pad_n = (d_out > 128) and (d_out % 128 != 0)
    if pad_n:
        d_out_p = _round_up(d_out, 128)
        weight_t = jnp.pad(weight_t, ((0, 0), (0, d_out_p - d_out)))
        bias = jnp.pad(bias, (0, d_out_p - d_out))
    else:
        d_out_p = d_out
    bias2d = bias.reshape(1, d_out_p)

    if mode in ("last", "first"):
        if l_output == L:
            # No restriction: zero-copy reshape into the GEMM M dimension.
            out = _flat_projection(x.reshape(B * L, D), weight_t, bias2d,
                                   block_m, block_n, vmem_limit)
            out = out.reshape(B, l_output, d_out_p)
        elif l_output >= block_l:
            # Large window: restrict inside the kernel via the index_map
            # (over-reads < 1 tile per batch, no XLA-side copy of the window).
            out = _restricted_projection(x, weight_t, bias2d, mode, l_output,
                                         block_l, vmem_limit)
        else:
            # Small window: the slice only touches l_output rows per batch —
            # cheaper than a tile-aligned over-read.  Flatten batch into M.
            if mode == "last":
                xr = jax.lax.slice_in_dim(x, L - l_output, L, axis=1)
            else:
                xr = jax.lax.slice_in_dim(x, 0, l_output, axis=1)
            out = _flat_projection(xr.reshape(B * l_output, D), weight_t,
                                   bias2d, block_m, block_n, vmem_limit)
            out = out.reshape(B, l_output, d_out_p)
    else:  # mode == "sum"
        out = _sum_projection(x, weight_t, bias2d, l_output, block_l,
                              vmem_limit)

    if pad_n:
        out = out[..., :d_out]
    if squeeze:
        out = out[:, 0, :]
    return out


# ---------------------------------------------------------------------------
# Pure-JAX reference mirroring the PyTorch semantics
# ---------------------------------------------------------------------------

def _reference_forward(x, weight_t, bias, *, l_output=None, mode="last"):
    L = x.shape[1]
    squeeze = False
    if l_output is None:
        l_output = L
    elif l_output == 0:
        l_output, squeeze = 1, True
    if mode == "last":
        xr = x[:, L - l_output:, :]
    elif mode == "first":
        xr = x[:, :l_output, :]
    elif mode == "sum":
        xr = jnp.cumsum(x, axis=1)[:, L - l_output:, :]
    else:
        raise NotImplementedError(mode)
    y = xr @ weight_t + bias
    if squeeze:
        y = y[:, 0, :]
    return y


if __name__ == "__main__":
    # SequenceDecoder(d_model=32, d_output=16, l_output=8)
    B, L, D, D_OUT = 2, 16, 32, 16

    key = jax.random.PRNGKey(0)
    kx, kx2, kw, kb, kw2, kb2 = jax.random.split(key, 6)

    x = jax.random.normal(kx, (B, L, D), dtype=jnp.float32)
    x2 = jax.random.normal(kx2, (B, 20, D), dtype=jnp.float32)   # ragged L

    # PyTorch nn.Linear weight has shape (d_output, d_model); store transpose.
    w_pt = jax.random.normal(kw, (D_OUT, D), dtype=jnp.float32) / jnp.sqrt(D)
    weight_t = w_pt.T                                            # (D, D_OUT)
    bias = 0.1 * jax.random.normal(kb, (D_OUT,), dtype=jnp.float32)

    # Wide head to exercise the d_out%128 lane-padding path.
    D_OUT_W = 160
    weight_t_w = jax.random.normal(kw2, (D, D_OUT_W),
                                   dtype=jnp.float32) / jnp.sqrt(D)
    bias_w = 0.1 * jax.random.normal(kb2, (D_OUT_W,), dtype=jnp.float32)

    cases = [
        # (name, x, weight_t, bias, kwargs)
        ("last/fastpath", x, weight_t, bias,
         dict(l_output=8, mode="last")),
        ("last/flat", x, weight_t, bias,
         dict(l_output=8, mode="last", min_pallas_m=0)),
        ("first/flat", x, weight_t, bias,
         dict(l_output=8, mode="first", min_pallas_m=0)),
        ("last/full-reshape", x, weight_t, bias,
         dict(l_output=None, mode="last", min_pallas_m=0)),
        ("last/in-kernel-restrict", x, weight_t, bias,
         dict(l_output=12, mode="last", min_pallas_m=0, block_l=8)),
        ("last/in-kernel-restrict-aligned", x, weight_t, bias,
         dict(l_output=8, mode="last", min_pallas_m=0, block_l=8)),
        ("last/in-kernel-restrict-clipped", x2, weight_t, bias,
         dict(l_output=12, mode="last", min_pallas_m=0, block_l=8)),
        ("first/in-kernel-restrict", x, weight_t, bias,
         dict(l_output=12, mode="first", min_pallas_m=0, block_l=8)),
        ("sum/single-tile", x, weight_t, bias,
         dict(l_output=8, mode="sum")),
        ("sum/l-tiled", x, weight_t, bias,
         dict(l_output=8, mode="sum", block_l=8)),
        ("sum/full-length", x, weight_t, bias,
         dict(l_output=None, mode="sum", block_l=8)),
        ("sum/l-tiled-ragged", x2, weight_t, bias,
         dict(l_output=8, mode="sum", block_l=8)),
        ("last/squeeze", x, weight_t, bias,
         dict(l_output=0, mode="last")),
        ("last/squeeze-kernel", x, weight_t, bias,
         dict(l_output=0, mode="last", min_pallas_m=0)),
        ("last/wide-head-pad", x, weight_t_w, bias_w,
         dict(l_output=None, mode="last", min_pallas_m=0)),
    ]

    for name, x_in, w_in, b_in, kw_ in cases:
        y = sequence_decoder_forward(x_in, w_in, b_in, **kw_)
        y = jax.block_until_ready(y)
        y_ref = _reference_forward(x_in, w_in, b_in,
                                   l_output=kw_["l_output"], mode=kw_["mode"])
        tol = 1e-4 if kw_["mode"] == "sum" else 1e-5
        assert y.shape == y_ref.shape, (name, y.shape, y_ref.shape)
        assert jnp.allclose(y, y_ref, atol=tol, rtol=tol), f"mismatch: {name}"

    # bf16 smoke test on the flattened GEMM path (f32 MXU accumulation).
    xb = x.astype(jnp.bfloat16)
    wb = weight_t.astype(jnp.bfloat16)
    bb = bias.astype(jnp.bfloat16)
    yb = jax.block_until_ready(
        sequence_decoder_forward(xb, wb, bb, l_output=None, mode="last",
                                 min_pallas_m=0))
    yb_ref = _reference_forward(xb.astype(jnp.float32), wb.astype(jnp.float32),
                                bb.astype(jnp.float32), l_output=None,
                                mode="last")
    assert yb.shape == yb_ref.shape
    assert jnp.allclose(yb.astype(jnp.float32), yb_ref,
                        atol=5e-2, rtol=5e-2), "mismatch: bf16"

    print("KERNEL_OK")
</pallas_src>

<mosaic_0001>
module attributes {stable_mosaic.version = 11 : i64} {
  func.func @_flat_matmul_bias_kernel(%arg0: i32, %arg1: i32, %arg2: memref<16x32xf32, #tpu.memory_space<vmem>>, %arg3: memref<32x16xf32, #tpu.memory_space<vmem>>, %arg4: memref<1x16xf32, #tpu.memory_space<vmem>>, %arg5: memref<16x16xf32, #tpu.memory_space<vmem>>) attributes {dimension_semantics = [#tpu.dimension_semantics<parallel>, #tpu.dimension_semantics<parallel>], iteration_bounds = array<i64: 1, 1>, scalar_prefetch = 0 : i64, scratch_operands = 0 : i64, tpu.core_type = #tpu.core_type<tc>, window_params = [{transform_indices = @transform_0, window_bounds = array<i64: 16, 32>}, {transform_indices = @transform_1, window_bounds = array<i64: 32, 16>}, {transform_indices = @transform_2, window_bounds = array<i64: 1, 16>}, {transform_indices = @transform_3, window_bounds = array<i64: 16, 16>}]} {
    %c0 = arith.constant 0 : index
    %c0_0 = arith.constant 0 : index
    %0 = vector.load %arg2[%c0, %c0_0] : memref<16x32xf32, #tpu.memory_space<vmem>>, vector<16x32xf32>
    %c0_1 = arith.constant 0 : index
    %c0_2 = arith.constant 0 : index
    %1 = vector.load %arg3[%c0_1, %c0_2] : memref<32x16xf32, #tpu.memory_space<vmem>>, vector<32x16xf32>
    %cst = arith.constant dense<0.000000e+00> : vector<16x16xf32>
    %2 = tpu.matmul %0, %1, %cst {dimension_numbers = #tpu.dot_dimension_numbers<[1], [0], [0], [1], [0, 0, 1, 1], [], []>} : vector<16x32xf32>, vector<32x16xf32>, vector<16x16xf32> -> vector<16x16xf32>
    %c0_3 = arith.constant 0 : index
    %c0_4 = arith.constant 0 : index
    %3 = vector.load %arg4[%c0_3, %c0_4] : memref<1x16xf32, #tpu.memory_space<vmem>>, vector<1x16xf32>
    %4 = vector.broadcast %3 : vector<1x16xf32> to vector<16x16xf32>
    %5 = arith.addf %2, %4 : vector<16x16xf32>
    %c0_5 = arith.constant 0 : index
    %c0_6 = arith.constant 0 : index
    %6 = vector.load %arg5[%c0_5, %c0_6] : memref<16x16xf32, #tpu.memory_space<vmem>>, vector<16x16xf32>
    tpu.vector_store %arg5[%c0_5, %c0_6], %5 {strides = array<i32>} : memref<16x16xf32, #tpu.memory_space<vmem>>, vector<16x16xf32>,
    return
  }
  func.func @transform_0(%arg0: i32, %arg1: i32) -> (i32, i32) {
    %c0_i32 = arith.constant 0 : i32
    %c0_i32_0 = arith.constant 0 : i32
    return %arg0, %c0_i32 : i32, i32
  }
  func.func @transform_1(%arg0: i32, %arg1: i32) -> (i32, i32) {
    %c0_i32 = arith.constant 0 : i32
    %c0_i32_0 = arith.constant 0 : i32
    return %c0_i32, %arg1 : i32, i32
  }
  func.func @transform_2(%arg0: i32, %arg1: i32) -> (i32, i32) {
    %c0_i32 = arith.constant 0 : i32
    %c0_i32_0 = arith.constant 0 : i32
    return %c0_i32, %arg1 : i32, i32
  }
  func.func @transform_3(%arg0: i32, %arg1: i32) -> (i32, i32) {
    %c0_i32 = arith.constant 0 : i32
    return %arg0, %arg1 : i32, i32
  }
}

</mosaic_0001>

<bundles_post_ra>
// kernel: tpu_custom_call.1
= control target key start
LH: loop header
LB: loop body
LE: loop exit
PB: predicated region body
PF: predicated region fallthrough
CT: control target
= control target key end

     0   :  { %s159_s0 = inlined_call_operand.vmem [shape: f32[16,32], index: 0, kind: input, shape index: {}]   ;;  %s160_s1 = inlined_call_operand.vmem [shape: f32[32,16], index: 1, kind: input, shape index: {}]   ;;  %s161_s2 = inlined_call_operand.vmem [shape: f32[1,16], index: 2, kind: input, shape index: {}]   ;;  %s162_s3 = inlined_call_operand.hbm [shape: f32[16,16], index: 3, kind: output, shape index: {}]  }
   0x1   :  { %v20_v0 = vld [vmem:[%s160_s1 + $0x18] sm:$0xff]  ;;  %v19_v1 = vld [vmem:[%s160_s1 + $0x10] sm:$0xff]  ;;  %v18_v2 = vld [vmem:[%s160_s1 + $0x8] sm:$0xff] }
   0x2   :  { %44 = vmatpush.msra.mxu0 %v20_v0  ;;  %78 = vmatpush.msra.mxu1 %v20_v0 }
   0x3   :  { %8 = vsyncpa [#allocation3], 0  ;;  %v17_v3 = vld [vmem:[%s160_s1] sm:$0xff]  ;;  %vm25_vm0 = vcmask 261120   ;;  %v16_v5 = vld [vmem:[%s159_s0 + $0x8] sm:$0xff]  ;;  %s112_s1 = smov [#allocation2]  }
   0x4   :  { %45 = vmatpush.msra.mxu0 %v19_v1  ;;  %79 = vmatpush.msra.mxu1 %v19_v1  ;;  %v15_v4 = vld [vmem:[%s159_s0] sm:$0xff]  ;;  %s62_s26 = sshll.u32 %s112_s1, 4  ;;  %s64_s29 = sshll.u32 %s162_s3, 4  ;;  %vm55_vm1 = vcmask 130048   ;;  %s63_s26 = int_to_ptr.vmem [resolvable:$true] %s62_s26  ;;  %s65_s29 = int_to_ptr.hbm [resolvable:$true] %s64_s29 }
   0x5   :  { %v85_v6 = vld [vmem:[%s161_s2] ss:$0 sm:$0xff]  ;;  %s113_s0 = smov 128   ;;  %s114_s30 = smov 8  }
   0x6   :  { %46 = vmatpush.msra.mxu0 %v18_v2  ;;  %80 = vmatpush.msra.mxu1 %v18_v2 }
   0x8   :  { %47 = vmatpush.msra.mxu0 %v17_v3  ;;  %81 = vmatpush.msra.mxu1 %v17_v3 }
   0x9   :  { %76 = vmatmul.msk.f32.vlgmr.msra.gmra.mxu0 %vm25_vm0, %v15_v4  ;;  %77 = vmatmul.msk.f32.vlgmr.msra.gmra.mxu1 %vm25_vm0, %v16_v5 }
  0x86   :  { %v49_v7 = vpop.f32.mrf.mxu0  ;;  %v52_v8 = vpop.f32.mrf.mxu1 }
  0x87   :  { %v50_v9 = vadd.f32 %v85_v6, %v49_v7  ;;  %v53_v10 = vadd.f32 %v85_v6, %v52_v8 }
  0x89   :  { %56 = vst.msk [vmem:[#allocation2] sm:$0xff] %vm55_vm1, %v50_v9 }
  0x8a   :  { %57 = vst.msk [vmem:[#allocation2 + $0x8] sm:$0xff] %vm55_vm1, %v53_v10 }
  0x8b   :  { %70 = dma.vmem_to_hbm [thread:$0]  %s63_s26, 256, %s65_s29, [#allocation3], %s113_s0, %s113_s0, %s114_s30  }
  0x8c   :  { %110 = dma.done.wait [#allocation3], 256  }
  0x8d   :  { %111 = vsyncadd [#allocation3], 4294967040 }
  0x8e   :  { %75 = vsyncpa [#allocation3], 1 }

</bundles_post_ra>
